<compile_context>
chip_gen: v7x
topology: tpu7x:2x2x1
jax: 0.10.0
libtpu: 0.0.40
codegen_flags: <defaults>
</compile_context>

<pallas_src>
import functools

import jax
import jax.numpy as jnp
from jax import lax
from jax.experimental import pallas as pl
from jax.experimental.pallas import tpu as pltpu


# ----------------------------- Pallas kernel --------------------------------

def _encoder_block_kernel(bblk, H, W, Cin, Cout,
                          x_ref, w1_ref, b1_ref, w2_ref, b2_ref,
                          sh_ref, tsel_ref, ssel_ref,
                          conv_ref, pool_ref):
    """Fused ConvBlock + 2x2 MaxPool for bblk images stacked along M.

    x_ref:    (bblk, H, W*Cin)              inputs, channels merged into lanes
    w1_ref:   (3*W*Cin,  W*Cout)  bf16      banded im2col weights, taps in K
    b1_ref:   (1, W*Cout)         f32
    w2_ref:   (3*W*Cout, W*Cout)  bf16
    b2_ref:   (1, W*Cout)         f32
    sh_ref:   (2, M, M)           f32       row-shift selectors (up / down),
                                            zero rows at image boundaries
    tsel_ref: (2, M//2, M)        f32       pool row selectors (even / odd)
    ssel_ref: (2, W*Cout, (W//2)*Cout) f32  pool column selectors
    conv_ref: (1, M, W*Cout)                'convolved' (lane-dense, 128 lanes)
    pool_ref: (1, H//2, bblk*(W//2)*Cout)   'encoded' (images packed in lanes)
    """
    f32 = jnp.float32
    bf16 = jnp.bfloat16
    M = bblk * H
    WCi = W * Cin
    WCo = W * Cout
    Hh = H // 2

    sh_up = sh_ref[0]        # picks row y-1 (zero row at each image's top)
    sh_dn = sh_ref[1]        # picks row y+1 (zero row at each image's bottom)

    # ---- conv_1: build (M, 3*W*Cin) im2col operand with shift-selector dots
    #      (exact 0/1 matmuls = vertical 'same' padding), then ONE bf16 dot.
    x = x_ref[...].reshape(M, WCi)                                  # f32
    x_up = jnp.dot(sh_up, x, preferred_element_type=f32)
    x_dn = jnp.dot(sh_dn, x, preferred_element_type=f32)
    a1 = jnp.concatenate([x_up, x, x_dn], axis=1).astype(bf16)      # (M, 3*WCi)
    relu1 = jnp.maximum(
        jnp.dot(a1, w1_ref[...], preferred_element_type=f32) + b1_ref[...],
        0.0)                                                        # (M, WCo) f32

    # ---- conv_2: same scheme; the intermediate never leaves VMEM/vregs ----
    h_up = jnp.dot(sh_up, relu1, preferred_element_type=f32)
    h_dn = jnp.dot(sh_dn, relu1, preferred_element_type=f32)
    a2 = jnp.concatenate([h_up, relu1, h_dn], axis=1).astype(bf16)  # (M, 3*WCo)
    relu2 = jnp.maximum(
        jnp.dot(a2, w2_ref[...], preferred_element_type=f32) + b2_ref[...],
        0.0)                                                        # (M, WCo) f32

    # lane-dense (128-lane) store of 'convolved'
    conv_ref[0] = relu2.astype(conv_ref.dtype)

    # ---- MaxPool 2x2 stride 2 via constant 0/1 selector matmuls (f32, exact)
    hmax = jnp.maximum(
        jnp.dot(tsel_ref[0], relu2, preferred_element_type=f32),
        jnp.dot(tsel_ref[1], relu2, preferred_element_type=f32))    # (M//2, WCo)
    pooled = jnp.maximum(
        jnp.dot(hmax, ssel_ref[0], preferred_element_type=f32),
        jnp.dot(hmax, ssel_ref[1], preferred_element_type=f32))     # (M//2, Wh*Cout)

    # pack bblk images side-by-side along lanes -> minor dim >= 128 (unmasked
    # stores); undone by a wrapper-side reshape.
    packed = jnp.concatenate(
        [pooled[b * Hh:(b + 1) * Hh, :] for b in range(bblk)], axis=1)
    pool_ref[0] = packed.astype(pool_ref.dtype)


# ------------------------------ wrapper --------------------------------------

def _fold_weights(w_oihw, W, dtype):
    """Fold the 3 horizontal taps + input channels of a 3x3 'same' conv into a
    banded im2col matrix, with the 3 vertical taps stacked along K:
      out[dy*W*Cin + xi*Cin + ci, xo*Cout + co] = w[dy, xi-xo+1, ci, co]
    inside the 3-wide band, 0 outside (edge clipping = zero padding along W).
    """
    cout, cin, kh, kw = w_oihw.shape
    w = jnp.transpose(w_oihw, (2, 3, 1, 0))          # (kh, kw, cin, cout)
    m = jnp.zeros((kh, W * cin, W * cout), w_oihw.dtype)
    for xo in range(W):
        for dx in range(kw):
            xi = xo + dx - 1
            if 0 <= xi < W:
                m = m.at[:, xi * cin:(xi + 1) * cin,
                         xo * cout:(xo + 1) * cout].set(w[:, dx])
    return m.reshape(kh * W * cin, W * cout).astype(dtype)


@jax.jit
def encoder_block(x_nchw, params):
    """EncoderBlock.forward.  x_nchw: (B, Cin, H, W) (PyTorch layout);
    params = (w1, b1, w2, b2), conv weights in OIHW.  Returns
    (convolved, encoded) in NCHW, matching the PyTorch module."""
    w1, b1, w2, b2 = params
    B, Cin, H, W = x_nchw.shape
    Cout = w1.shape[0]
    assert H % 2 == 0 and W % 2 == 0

    # Images per grid step (M = bblk*H rows per conv dot).  Cap M at 256 (MXU
    # rows on v6e/v7x); for large B on v7x keep B//bblk a multiple of 2 so both
    # TensorCores get grid steps.
    bblk = 1
    for d in range(1, B + 1):
        if B % d == 0 and d * H <= 256:
            bblk = d
    nsteps = B // bblk
    M = bblk * H
    WCi, WCo = W * Cin, W * Cout
    Hh, Wh = H // 2, W // 2

    # ---- layout plumbing + hoisted constants (trace-time / XLA only) ----
    x_rows = jnp.transpose(x_nchw, (0, 2, 3, 1)).reshape(B, H, WCi)
    x_rows = x_rows.astype(jnp.float32)
    w1f = _fold_weights(w1, W, jnp.bfloat16)                 # (3*WCi, WCo)
    w2f = _fold_weights(w2, W, jnp.bfloat16)                 # (3*WCo, WCo)
    b1t = jnp.tile(b1, W).reshape(1, WCo).astype(jnp.float32)
    b2t = jnp.tile(b2, W).reshape(1, WCo).astype(jnp.float32)

    # row-shift selectors (also zero out rows across per-image boundaries)
    r2 = jnp.arange(M)[:, None]
    c2 = jnp.arange(M)[None, :]
    in_row = r2 % H
    sh_up = ((c2 == r2 - 1) & (in_row != 0)).astype(jnp.float32)
    sh_dn = ((c2 == r2 + 1) & (in_row != H - 1)).astype(jnp.float32)
    shifts = jnp.stack([sh_up, sh_dn], axis=0)               # (2, M, M)

    # max-pool row selectors (even / odd image rows)
    pr = jnp.arange(M // 2)[:, None]
    pc = jnp.arange(M)[None, :]
    tsel = jnp.stack([(pc == 2 * pr).astype(jnp.float32),
                      (pc == 2 * pr + 1).astype(jnp.float32)], axis=0)

    # max-pool column selectors (even / odd image columns, Cout-wide groups)
    ci = jnp.arange(WCo)[:, None]
    cj = jnp.arange(Wh * Cout)[None, :]
    grp = (cj // Cout) * Cout
    ssel = jnp.stack([(ci == cj + grp).astype(jnp.float32),
                      (ci == cj + grp + Cout).astype(jnp.float32)], axis=0)

    kernel = functools.partial(_encoder_block_kernel, bblk, H, W, Cin, Cout)
    conv_flat, pool_flat = pl.pallas_call(
        kernel,
        out_shape=(
            jax.ShapeDtypeStruct((nsteps, M, WCo), jnp.float32),
            jax.ShapeDtypeStruct((nsteps, Hh, bblk * Wh * Cout), jnp.float32),
        ),
        grid_spec=pltpu.PrefetchScalarGridSpec(
            num_scalar_prefetch=0,
            grid=(nsteps,),
            in_specs=[
                pl.BlockSpec((bblk, H, WCi), lambda i: (i, 0, 0)),
                pl.BlockSpec((3 * WCi, WCo), lambda i: (0, 0)),
                pl.BlockSpec((1, WCo), lambda i: (0, 0)),
                pl.BlockSpec((3 * WCo, WCo), lambda i: (0, 0)),
                pl.BlockSpec((1, WCo), lambda i: (0, 0)),
                pl.BlockSpec((2, M, M), lambda i: (0, 0, 0)),
                pl.BlockSpec((2, M // 2, M), lambda i: (0, 0, 0)),
                pl.BlockSpec((2, WCo, Wh * Cout), lambda i: (0, 0, 0)),
            ],
            out_specs=[
                pl.BlockSpec((1, M, WCo), lambda i: (i, 0, 0)),
                pl.BlockSpec((1, Hh, bblk * Wh * Cout), lambda i: (i, 0, 0)),
            ],
        ),
        compiler_params=pltpu.CompilerParams(
            dimension_semantics=("parallel",)),
    )(x_rows, w1f, b1t, w2f, b2t, shifts, tsel, ssel)

    # un-pack the lane-dense layouts back to NCHW
    convolved = jnp.transpose(conv_flat.reshape(B, H, W, Cout), (0, 3, 1, 2))
    encoded = jnp.transpose(
        pool_flat.reshape(nsteps, Hh, bblk, Wh, Cout),
        (0, 2, 4, 1, 3)).reshape(B, Cout, Hh, Wh)
    return convolved, encoded


# ---------------------------- pure-JAX reference -----------------------------

def _encoder_block_ref(x_nchw, params):
    w1, b1, w2, b2 = params

    def conv_relu(x, w, b):
        y = lax.conv_general_dilated(
            x, w, window_strides=(1, 1), padding=((1, 1), (1, 1)),
            dimension_numbers=("NCHW", "OIHW", "NCHW"))
        return jnp.maximum(y + b[None, :, None, None], 0.0)

    convolved = conv_relu(conv_relu(x_nchw, w1, b1), w2, b2)
    encoded = lax.reduce_window(convolved, -jnp.inf, lax.max,
                                (1, 1, 2, 2), (1, 1, 2, 2), "VALID")
    return convolved, encoded


# --------------------------------- main ---------------------------------------

if __name__ == "__main__":
    B, Cin, Cout, H, W = 2, 4, 8, 16, 16

    key = jax.random.PRNGKey(0)
    kx, kw1, kb1, kw2, kb2 = jax.random.split(key, 5)

    # PyTorch-style NCHW input and OIHW conv weights.
    x = jax.random.normal(kx, (B, Cin, H, W), dtype=jnp.float32)
    w1 = 0.1 * jax.random.normal(kw1, (Cout, Cin, 3, 3), dtype=jnp.float32)
    b1 = 0.1 * jax.random.normal(kb1, (Cout,), dtype=jnp.float32)
    w2 = 0.1 * jax.random.normal(kw2, (Cout, Cout, 3, 3), dtype=jnp.float32)
    b2 = 0.1 * jax.random.normal(kb2, (Cout,), dtype=jnp.float32)
    params = (w1, b1, w2, b2)

    convolved, encoded = encoder_block(x, params)
    convolved = jax.block_until_ready(convolved)
    encoded = jax.block_until_ready(encoded)

    conv_ref, enc_ref = _encoder_block_ref(x, params)
    assert convolved.shape == (B, Cout, H, W)
    assert encoded.shape == (B, Cout, H // 2, W // 2)
    # bf16 matmul operands with f32 accumulation -> loosened tolerance
    # (measured worst-case deviation is ~1e-2 absolute at these scales).
    assert jnp.allclose(convolved, conv_ref, atol=3e-2, rtol=3e-2)
    assert jnp.allclose(encoded, enc_ref, atol=3e-2, rtol=3e-2)

    print("KERNEL_OK")
</pallas_src>

<mosaic_0001>
module attributes {stable_mosaic.version = 11 : i64} {
  func.func @_encoder_block_kernel(%arg0: i32, %arg1: memref<2x16x64xf32, #tpu.memory_space<vmem>>, %arg2: memref<192x128xbf16, #tpu.memory_space<vmem>>, %arg3: memref<1x128xf32, #tpu.memory_space<vmem>>, %arg4: memref<384x128xbf16, #tpu.memory_space<vmem>>, %arg5: memref<1x128xf32, #tpu.memory_space<vmem>>, %arg6: memref<2x32x32xf32, #tpu.memory_space<vmem>>, %arg7: memref<2x16x32xf32, #tpu.memory_space<vmem>>, %arg8: memref<2x128x64xf32, #tpu.memory_space<vmem>>, %arg9: memref<1x32x128xf32, #tpu.memory_space<vmem>>, %arg10: memref<1x8x128xf32, #tpu.memory_space<vmem>>) attributes {dimension_semantics = [#tpu.dimension_semantics<parallel>], iteration_bounds = array<i64: 1>, scalar_prefetch = 0 : i64, scratch_operands = 0 : i64, tpu.core_type = #tpu.core_type<tc>, window_params = [{transform_indices = @transform_0, window_bounds = array<i64: 2, 16, 64>}, {pipeline_mode = #tpu.pipeline_mode<synchronous>, transform_indices = @transform_1, window_bounds = array<i64: 192, 128>}, {pipeline_mode = #tpu.pipeline_mode<synchronous>, transform_indices = @transform_2, window_bounds = array<i64: 1, 128>}, {pipeline_mode = #tpu.pipeline_mode<synchronous>, transform_indices = @transform_3, window_bounds = array<i64: 384, 128>}, {pipeline_mode = #tpu.pipeline_mode<synchronous>, transform_indices = @transform_4, window_bounds = array<i64: 1, 128>}, {pipeline_mode = #tpu.pipeline_mode<synchronous>, transform_indices = @transform_5, window_bounds = array<i64: 2, 32, 32>}, {pipeline_mode = #tpu.pipeline_mode<synchronous>, transform_indices = @transform_6, window_bounds = array<i64: 2, 16, 32>}, {pipeline_mode = #tpu.pipeline_mode<synchronous>, transform_indices = @transform_7, window_bounds = array<i64: 2, 128, 64>}, {transform_indices = @transform_8, window_bounds = array<i64: 1, 32, 128>}, {transform_indices = @transform_9, window_bounds = array<i64: 1, 8, 128>}]} {
    %c0 = arith.constant 0 : index
    %c0_0 = arith.constant 0 : index
    %c0_1 = arith.constant 0 : index
    %0 = vector.load %arg6[%c0, %c0_0, %c0_1] : memref<2x32x32xf32, #tpu.memory_space<vmem>>, vector<1x32x32xf32>
    %1 = vector.shape_cast %0 : vector<1x32x32xf32> to vector<32x32xf32>
    %c1 = arith.constant 1 : index
    %c0_2 = arith.constant 0 : index
    %c0_3 = arith.constant 0 : index
    %2 = vector.load %arg6[%c1, %c0_2, %c0_3] : memref<2x32x32xf32, #tpu.memory_space<vmem>>, vector<1x32x32xf32>
    %3 = vector.shape_cast %2 : vector<1x32x32xf32> to vector<32x32xf32>
    %c0_4 = arith.constant 0 : index
    %c0_5 = arith.constant 0 : index
    %c0_6 = arith.constant 0 : index
    %4 = vector.load %arg1[%c0_4, %c0_5, %c0_6] : memref<2x16x64xf32, #tpu.memory_space<vmem>>, vector<2x16x64xf32>
    %5 = vector.shape_cast %4 : vector<2x16x64xf32> to vector<32x64xf32>
    %cst = arith.constant dense<0.000000e+00> : vector<32x64xf32>
    %6 = tpu.matmul %1, %5, %cst {dimension_numbers = #tpu.dot_dimension_numbers<[1], [0], [0], [1], [0, 0, 1, 1], [], []>} : vector<32x32xf32>, vector<32x64xf32>, vector<32x64xf32> -> vector<32x64xf32>
    %cst_7 = arith.constant dense<0.000000e+00> : vector<32x64xf32>
    %7 = tpu.matmul %3, %5, %cst_7 {dimension_numbers = #tpu.dot_dimension_numbers<[1], [0], [0], [1], [0, 0, 1, 1], [], []>} : vector<32x32xf32>, vector<32x64xf32>, vector<32x64xf32> -> vector<32x64xf32>
    %8 = tpu.concatenate %6, %5, %7 in 1 : vector<32x64xf32>, vector<32x64xf32>, vector<32x64xf32> -> vector<32x192xf32>
    %9 = arith.truncf %8 : vector<32x192xf32> to vector<32x192xbf16>
    %c0_8 = arith.constant 0 : index
    %c0_9 = arith.constant 0 : index
    %10 = vector.load %arg2[%c0_8, %c0_9] : memref<192x128xbf16, #tpu.memory_space<vmem>>, vector<192x128xbf16>
    %cst_10 = arith.constant dense<0.000000e+00> : vector<32x128xf32>
    %11 = tpu.matmul %9, %10, %cst_10 {dimension_numbers = #tpu.dot_dimension_numbers<[1], [0], [0], [1], [0, 0, 1, 1], [], []>} : vector<32x192xbf16>, vector<192x128xbf16>, vector<32x128xf32> -> vector<32x128xf32>
    %c0_11 = arith.constant 0 : index
    %c0_12 = arith.constant 0 : index
    %12 = vector.load %arg3[%c0_11, %c0_12] : memref<1x128xf32, #tpu.memory_space<vmem>>, vector<1x128xf32>
    %13 = vector.broadcast %12 : vector<1x128xf32> to vector<32x128xf32>
    %14 = arith.addf %11, %13 : vector<32x128xf32>
    %cst_13 = arith.constant 0.000000e+00 : f32
    %15 = vector.broadcast %cst_13 : f32 to vector<32x128xf32>
    %16 = arith.maximumf %14, %15 : vector<32x128xf32>
    %cst_14 = arith.constant dense<0.000000e+00> : vector<32x128xf32>
    %17 = tpu.matmul %1, %16, %cst_14 {dimension_numbers = #tpu.dot_dimension_numbers<[1], [0], [0], [1], [0, 0, 1, 1], [], []>} : vector<32x32xf32>, vector<32x128xf32>, vector<32x128xf32> -> vector<32x128xf32>
    %cst_15 = arith.constant dense<0.000000e+00> : vector<32x128xf32>
    %18 = tpu.matmul %3, %16, %cst_15 {dimension_numbers = #tpu.dot_dimension_numbers<[1], [0], [0], [1], [0, 0, 1, 1], [], []>} : vector<32x32xf32>, vector<32x128xf32>, vector<32x128xf32> -> vector<32x128xf32>
    %19 = tpu.concatenate %17, %16, %18 in 1 : vector<32x128xf32>, vector<32x128xf32>, vector<32x128xf32> -> vector<32x384xf32>
    %20 = arith.truncf %19 : vector<32x384xf32> to vector<32x384xbf16>
    %c0_16 = arith.constant 0 : index
    %c0_17 = arith.constant 0 : index
    %21 = vector.load %arg4[%c0_16, %c0_17] : memref<384x128xbf16, #tpu.memory_space<vmem>>, vector<384x128xbf16>
    %cst_18 = arith.constant dense<0.000000e+00> : vector<32x128xf32>
    %22 = tpu.matmul %20, %21, %cst_18 {dimension_numbers = #tpu.dot_dimension_numbers<[1], [0], [0], [1], [0, 0, 1, 1], [], []>} : vector<32x384xbf16>, vector<384x128xbf16>, vector<32x128xf32> -> vector<32x128xf32>
    %c0_19 = arith.constant 0 : index
    %c0_20 = arith.constant 0 : index
    %23 = vector.load %arg5[%c0_19, %c0_20] : memref<1x128xf32, #tpu.memory_space<vmem>>, vector<1x128xf32>
    %24 = vector.broadcast %23 : vector<1x128xf32> to vector<32x128xf32>
    %25 = arith.addf %22, %24 : vector<32x128xf32>
    %cst_21 = arith.constant 0.000000e+00 : f32
    %26 = vector.broadcast %cst_21 : f32 to vector<32x128xf32>
    %27 = arith.maximumf %25, %26 : vector<32x128xf32>
    %c0_22 = arith.constant 0 : index
    %c0_23 = arith.constant 0 : index
    %c0_24 = arith.constant 0 : index
    %28 = vector.load %arg9[%c0_22, %c0_23, %c0_24] : memref<1x32x128xf32, #tpu.memory_space<vmem>>, vector<1x32x128xf32>
    %29 = vector.shape_cast %28 : vector<1x32x128xf32> to vector<32x128xf32>
    %30 = vector.shape_cast %27 : vector<32x128xf32> to vector<1x32x128xf32>
    tpu.vector_store %arg9[%c0_22, %c0_23, %c0_24], %30 {strides = array<i32>} : memref<1x32x128xf32, #tpu.memory_space<vmem>>, vector<1x32x128xf32>,
    %c0_25 = arith.constant 0 : index
    %c0_26 = arith.constant 0 : index
    %c0_27 = arith.constant 0 : index
    %31 = vector.load %arg7[%c0_25, %c0_26, %c0_27] : memref<2x16x32xf32, #tpu.memory_space<vmem>>, vector<1x16x32xf32>
    %32 = vector.shape_cast %31 : vector<1x16x32xf32> to vector<16x32xf32>
    %cst_28 = arith.constant dense<0.000000e+00> : vector<16x128xf32>
    %33 = tpu.matmul %32, %27, %cst_28 {dimension_numbers = #tpu.dot_dimension_numbers<[1], [0], [0], [1], [0, 0, 1, 1], [], []>} : vector<16x32xf32>, vector<32x128xf32>, vector<16x128xf32> -> vector<16x128xf32>
    %c1_29 = arith.constant 1 : index
    %c0_30 = arith.constant 0 : index
    %c0_31 = arith.constant 0 : index
    %34 = vector.load %arg7[%c1_29, %c0_30, %c0_31] : memref<2x16x32xf32, #tpu.memory_space<vmem>>, vector<1x16x32xf32>
    %35 = vector.shape_cast %34 : vector<1x16x32xf32> to vector<16x32xf32>
    %cst_32 = arith.constant dense<0.000000e+00> : vector<16x128xf32>
    %36 = tpu.matmul %35, %27, %cst_32 {dimension_numbers = #tpu.dot_dimension_numbers<[1], [0], [0], [1], [0, 0, 1, 1], [], []>} : vector<16x32xf32>, vector<32x128xf32>, vector<16x128xf32> -> vector<16x128xf32>
    %37 = arith.maximumf %33, %36 : vector<16x128xf32>
    %c0_33 = arith.constant 0 : index
    %c0_34 = arith.constant 0 : index
    %c0_35 = arith.constant 0 : index
    %38 = vector.load %arg8[%c0_33, %c0_34, %c0_35] : memref<2x128x64xf32, #tpu.memory_space<vmem>>, vector<1x128x64xf32>
    %39 = vector.shape_cast %38 : vector<1x128x64xf32> to vector<128x64xf32>
    %cst_36 = arith.constant dense<0.000000e+00> : vector<16x64xf32>
    %40 = tpu.matmul %37, %39, %cst_36 {dimension_numbers = #tpu.dot_dimension_numbers<[1], [0], [0], [1], [0, 0, 1, 1], [], []>} : vector<16x128xf32>, vector<128x64xf32>, vector<16x64xf32> -> vector<16x64xf32>
    %c1_37 = arith.constant 1 : index
    %c0_38 = arith.constant 0 : index
    %c0_39 = arith.constant 0 : index
    %41 = vector.load %arg8[%c1_37, %c0_38, %c0_39] : memref<2x128x64xf32, #tpu.memory_space<vmem>>, vector<1x128x64xf32>
    %42 = vector.shape_cast %41 : vector<1x128x64xf32> to vector<128x64xf32>
    %cst_40 = arith.constant dense<0.000000e+00> : vector<16x64xf32>
    %43 = tpu.matmul %37, %42, %cst_40 {dimension_numbers = #tpu.dot_dimension_numbers<[1], [0], [0], [1], [0, 0, 1, 1], [], []>} : vector<16x128xf32>, vector<128x64xf32>, vector<16x64xf32> -> vector<16x64xf32>
    %44 = arith.maximumf %40, %43 : vector<16x64xf32>
    %45 = vector.extract_strided_slice %44 {offsets = [0, 0], sizes = [8, 64], strides = [1, 1]} : vector<16x64xf32> to vector<8x64xf32>
    %46 = vector.extract_strided_slice %44 {offsets = [8, 0], sizes = [8, 64], strides = [1, 1]} : vector<16x64xf32> to vector<8x64xf32>
    %47 = tpu.concatenate %45, %46 in 1 : vector<8x64xf32>, vector<8x64xf32> -> vector<8x128xf32>
    %c0_41 = arith.constant 0 : index
    %c0_42 = arith.constant 0 : index
    %c0_43 = arith.constant 0 : index
    %48 = vector.load %arg10[%c0_41, %c0_42, %c0_43] : memref<1x8x128xf32, #tpu.memory_space<vmem>>, vector<1x8x128xf32>
    %49 = vector.shape_cast %48 : vector<1x8x128xf32> to vector<8x128xf32>
    %50 = vector.shape_cast %47 : vector<8x128xf32> to vector<1x8x128xf32>
    tpu.vector_store %arg10[%c0_41, %c0_42, %c0_43], %50 {strides = array<i32>} : memref<1x8x128xf32, #tpu.memory_space<vmem>>, vector<1x8x128xf32>,
    return
  }
  func.func @transform_0(%arg0: i32) -> (i32, i32, i32) {
    %c0_i32 = arith.constant 0 : i32
    %c0_i32_0 = arith.constant 0 : i32
    %c0_i32_1 = arith.constant 0 : i32
    return %arg0, %c0_i32, %c0_i32_0 : i32, i32, i32
  }
  func.func @transform_1(%arg0: i32) -> (i32, i32) {
    %c0_i32 = arith.constant 0 : i32
    %c0_i32_0 = arith.constant 0 : i32
    %c0_i32_1 = arith.constant 0 : i32
    return %c0_i32, %c0_i32_0 : i32, i32
  }
  func.func @transform_2(%arg0: i32) -> (i32, i32) {
    %c0_i32 = arith.constant 0 : i32
    %c0_i32_0 = arith.constant 0 : i32
    %c0_i32_1 = arith.constant 0 : i32
    return %c0_i32, %c0_i32_0 : i32, i32
  }
  func.func @transform_3(%arg0: i32) -> (i32, i32) {
    %c0_i32 = arith.constant 0 : i32
    %c0_i32_0 = arith.constant 0 : i32
    %c0_i32_1 = arith.constant 0 : i32
    return %c0_i32, %c0_i32_0 : i32, i32
  }
  func.func @transform_4(%arg0: i32) -> (i32, i32) {
    %c0_i32 = arith.constant 0 : i32
    %c0_i32_0 = arith.constant 0 : i32
    %c0_i32_1 = arith.constant 0 : i32
    return %c0_i32, %c0_i32_0 : i32, i32
  }
  func.func @transform_5(%arg0: i32) -> (i32, i32, i32) {
    %c0_i32 = arith.constant 0 : i32
    %c0_i32_0 = arith.constant 0 : i32
    %c0_i32_1 = arith.constant 0 : i32
    %c0_i32_2 = arith.constant 0 : i32
    return %c0_i32, %c0_i32_0, %c0_i32_1 : i32, i32, i32
  }
  func.func @transform_6(%arg0: i32) -> (i32, i32, i32) {
    %c0_i32 = arith.constant 0 : i32
    %c0_i32_0 = arith.constant 0 : i32
    %c0_i32_1 = arith.constant 0 : i32
    %c0_i32_2 = arith.constant 0 : i32
    return %c0_i32, %c0_i32_0, %c0_i32_1 : i32, i32, i32
  }
  func.func @transform_7(%arg0: i32) -> (i32, i32, i32) {
    %c0_i32 = arith.constant 0 : i32
    %c0_i32_0 = arith.constant 0 : i32
    %c0_i32_1 = arith.constant 0 : i32
    %c0_i32_2 = arith.constant 0 : i32
    return %c0_i32, %c0_i32_0, %c0_i32_1 : i32, i32, i32
  }
  func.func @transform_8(%arg0: i32) -> (i32, i32, i32) {
    %c0_i32 = arith.constant 0 : i32
    %c0_i32_0 = arith.constant 0 : i32
    %c0_i32_1 = arith.constant 0 : i32
    return %arg0, %c0_i32, %c0_i32_0 : i32, i32, i32
  }
  func.func @transform_9(%arg0: i32) -> (i32, i32, i32) {
    %c0_i32 = arith.constant 0 : i32
    %c0_i32_0 = arith.constant 0 : i32
    %c0_i32_1 = arith.constant 0 : i32
    return %arg0, %c0_i32, %c0_i32_0 : i32, i32, i32
  }
}

</mosaic_0001>

<bundles_post_ra>
// kernel: tile.13
= control target key start
LH: loop header
LB: loop body
LE: loop exit
PB: predicated region body
PF: predicated region fallthrough
CT: control target
= control target key end

     0   :  { %s28_s0 = inlined_call_operand.vmem [shape: f32[8], index: 0, kind: input, shape index: {}]   ;;  %s29_s1 = inlined_call_operand.vmem [shape: f32[16,8], index: 1, kind: output, shape index: {}]  }
   0x1   :  { %v4_v0 = vld [vmem:[%s28_s0] ss:$0 sm:$0xff] }
   0x2   :  { %5 = vst [vmem:[%s29_s1] sm:$0xff] %v4_v0  ;;  %8 = vst [vmem:[%s29_s1 + $0x8] sm:$0xff] %v4_v0 }

// kernel: tile.14
= control target key start
LH: loop header
LB: loop body
LE: loop exit
PB: predicated region body
PF: predicated region fallthrough
CT: control target
= control target key end

     0   :  { %s131_s10 = smov 120   ;;  %s132_s11 = smov 104   ;;  %vm3_vm0 = vcmask 64512   ;;  %vm9_vm1 = vcmask 1048512   ;;  %vm15_vm2 = vcmask 982912   ;;  %vm21_vm3 = vcmask 917312   ;;  %s207_s0 = inlined_call_operand.vmem [shape: f32[16,8], index: 0, kind: input, shape index: {}]   ;;  %s208_s1 = inlined_call_operand.vmem [shape: f32[1,128], index: 1, kind: output, shape index: {}]  }
   0x1   :  { %v101_v0 = vld [vmem:[%s207_s0 + $0xf] sm:$0x1]   ;;  %v103_v1 = vld [vmem:[%s207_s0 + $0xd] sm:$0x1]   ;;  %v102_v2 = vld [vmem:[%s207_s0 + $0xe] sm:$0x1]  }
   0x2   :  { %7 = vrot.lane.b32.xlu0 %v101_v0, %s131_s10  ;;  %19 = vrot.lane.b32.xlu1 %v103_v1, %s132_s11  ;;  %v104_v3 = vld [vmem:[%s207_s0 + $0xc] sm:$0x1]   ;;  %s133_s16 = smov 112   ;;  %s134_s17 = smov 96   ;;  %v105_v4 = vld [vmem:[%s207_s0 + $0xb] sm:$0x1]  }
   0x3   :  { %v106_v5 = vld [vmem:[%s207_s0 + $0xa] sm:$0x1]   ;;  %v2_v6 = vld [vmem:[%s207_s0] sm:$0x1]   ;;  %s135_s24 = smov 88   ;;  %s136_s25 = smov 80  }
   0x4   :  { %4 = vst.msk [vmem:[#allocation0] sm:$0x1] %vm3_vm0, %v2_v6   ;;  %v107_v7 = vld [vmem:[%s207_s0 + $0x9] sm:$0x1]   ;;  %v108_v8 = vld [vmem:[%s207_s0 + $0x8] sm:$0x1]  }
   0x5   :  { %s137_s30 = smov 72   ;;  %s138_s2 = smov 64   ;;  %v109_v9 = vld [vmem:[%s207_s0 + $0x7] sm:$0x1]   ;;  %v110_v10 = vld [vmem:[%s207_s0 + $0x6] sm:$0x1]  }
   0x6   :  { %13 = vrot.lane.b32.xlu0 %v102_v2, %s133_s16  ;;  %25 = vrot.lane.b32.xlu1 %v104_v3, %s134_s17  ;;  %s139_s7 = smov 56   ;;  %s140_s8 = smov 48   ;;  %v111_v11 = vld [vmem:[%s207_s0 + $0x5] sm:$0x1]   ;;  %v112_v12 = vld [vmem:[%s207_s0 + $0x4] sm:$0x1]  }
   0x7   :  { %s141_s13 = smov 40   ;;  %s142_s14 = smov 32   ;;  %v113_v13 = vld [vmem:[%s207_s0 + $0x3] sm:$0x1]   ;;  %v114_v14 = vld [vmem:[%s207_s0 + $0x2] sm:$0x1]  }
   0x8   :  { %s143_s19 = smov 24   ;;  %s144_s20 = smov 16   ;;  %v115_v15 = vld [vmem:[%s207_s0 + $0x1] sm:$0x1]   ;;  %vm27_vm4 = vcmask 851712   ;;  %vm33_vm5 = vcmask 786112  }
   0x9   :  { %s145_s0 = smov 8   ;;  %vm39_vm6 = vcmask 720512   ;;  %vm45_vm7 = vcmask 654912   ;;  %vm51_vm8 = vcmask 589312   ;;  %vm57_vm9 = vcmask 523712  }
   0xa   :  { %31 = vrot.lane.b32.xlu0 %v105_v4, %s135_s24  ;;  %37 = vrot.lane.b32.xlu1 %v106_v5, %s136_s25  ;;  %vm63_vm10 = vcmask 458112   ;;  %vm69_vm11 = vcmask 392512   ;;  %vm75_vm12 = vcmask 326912   ;;  %vm81_vm13 = vcmask 261312  }
   0xb   :  { %vm87_vm14 = vcmask 195712   ;;  %vm93_vm15 = vcmask 130112  }
   0xe   :  { %43 = vrot.lane.b32.xlu0 %v107_v7, %s137_s30  ;;  %49 = vrot.lane.b32.xlu1 %v108_v8, %s138_s2 }
  0x12   :  { %55 = vrot.lane.b32.xlu0 %v109_v9, %s139_s7  ;;  %61 = vrot.lane.b32.xlu1 %v110_v10, %s140_s8 }
  0x16   :  { %67 = vrot.lane.b32.xlu0 %v111_v11, %s141_s13  ;;  %73 = vrot.lane.b32.xlu1 %v112_v12, %s142_s14 }
  0x1a   :  { %79 = vrot.lane.b32.xlu0 %v113_v13, %s143_s19  ;;  %85 = vrot.lane.b32.xlu1 %v114_v14, %s144_s20 }
  0x1e   :  { %91 = vrot.lane.b32.xlu0 %v115_v15, %s145_s0 }
  0x74   :  { %v8_v16 = vpop.permute.xlu0 %7   ;;  %v20_v17 = vpop.permute.xlu1 %19  }
  0x75   :  { %10 = vst.msk [vmem:[#allocation0] sm:$0x1] %vm9_vm1, %v8_v16  }
  0x78   :  { %v14_v18 = vpop.permute.xlu0 %13   ;;  %v26_v19 = vpop.permute.xlu1 %25  }
  0x79   :  { %16 = vst.msk [vmem:[#allocation0] sm:$0x1] %vm15_vm2, %v14_v18  }
  0x7a   :  { %22 = vst.msk [vmem:[#allocation0] sm:$0x1] %vm21_vm3, %v20_v17  }
  0x7b   :  { %28 = vst.msk [vmem:[#allocation0] sm:$0x1] %vm27_vm4, %v26_v19  }
  0x7c   :  { %v32_v20 = vpop.permute.xlu0 %31   ;;  %v38_v21 = vpop.permute.xlu1 %37  }
  0x7d   :  { %34 = vst.msk [vmem:[#allocation0] sm:$0x1] %vm33_vm5, %v32_v20  }
  0x7e   :  { %40 = vst.msk [vmem:[#allocation0] sm:$0x1] %vm39_vm6, %v38_v21  }
  0x80   :  { %v44_v22 = vpop.permute.xlu0 %43   ;;  %v50_v23 = vpop.permute.xlu1 %49  }
  0x81   :  { %46 = vst.msk [vmem:[#allocation0] sm:$0x1] %vm45_vm7, %v44_v22  }
  0x82   :  { %52 = vst.msk [vmem:[#allocation0] sm:$0x1] %vm51_vm8, %v50_v23  }
  0x84   :  { %v56_v24 = vpop.permute.xlu0 %55   ;;  %v62_v25 = vpop.permute.xlu1 %61  }
  0x85   :  { %58 = vst.msk [vmem:[#allocation0] sm:$0x1] %vm57_vm9, %v56_v24  }
  0x86   :  { %64 = vst.msk [vmem:[#allocation0] sm:$0x1] %vm63_vm10, %v62_v25  }
  0x88   :  { %v68_v26 = vpop.permute.xlu0 %67   ;;  %v74_v27 = vpop.permute.xlu1 %73  }
  0x89   :  { %70 = vst.msk [vmem:[#allocation0] sm:$0x1] %vm69_vm11, %v68_v26  }
  0x8a   :  { %76 = vst.msk [vmem:[#allocation0] sm:$0x1] %vm75_vm12, %v74_v27  }
  0x8c   :  { %v80_v28 = vpop.permute.xlu0 %79   ;;  %v86_v29 = vpop.permute.xlu1 %85  }
  0x8d   :  { %82 = vst.msk [vmem:[#allocation0] sm:$0x1] %vm81_vm13, %v80_v28  }
  0x8e   :  { %88 = vst.msk [vmem:[#allocation0] sm:$0x1] %vm87_vm14, %v86_v29  }
  0x90   :  { %v92_v30 = vpop.permute.xlu0 %91  }
  0x91   :  { %94 = vst.msk [vmem:[#allocation0] sm:$0x1] %vm93_vm15, %v92_v30  }
  0x98   :  { %v98_v31 = vld [vmem:[#allocation0] sm:$0x1] }
  0x99   :  { %100 = vst [vmem:[%s208_s1] sm:$0x1] %v98_v31 }

// kernel: encoder_block.1
= control target key start
LH: loop header
LB: loop body
LE: loop exit
PB: predicated region body
PF: predicated region fallthrough
CT: control target
= control target key end

     0   :  { %vm45_vm0 = vcmask 261120   ;;  %s1804_s24 = smov 64   ;;  %v1805_v14 = vmov 0   ;;  %vm256_vm1 = vcmask 523264   ;;  %s2194_s0 = inlined_call_operand.vmem [shape: f32[2,16,64], index: 0, kind: input, shape index: {}]   ;;  %s2195_s5 = inlined_call_operand.vmem [shape: f32[2,32,32], index: 5, kind: input, shape index: {}]   ;;  %s2196_s1 = inlined_call_operand.vmem [shape: bf16[192,128], index: 1, kind: input, shape index: {}]   ;;  %s2197_s3 = inlined_call_operand.vmem [shape: bf16[384,128], index: 3, kind: input, shape index: {}]   ;;  %s2198_s2 = inlined_call_operand.vmem [shape: f32[1,128], index: 2, kind: input, shape index: {}]   ;;  %s2199_s6 = inlined_call_operand.vmem [shape: f32[2,16,32], index: 6, kind: input, shape index: {}]   ;;  %s2200_s7 = inlined_call_operand.vmem [shape: f32[2,128,64], index: 7, kind: input, shape index: {}]   ;;  %s2201_s4 = inlined_call_operand.vmem [shape: f32[1,128], index: 4, kind: input, shape index: {}]   ;;  %s2202_s8 = inlined_call_operand.vmem [shape: f32[1,32,128], index: 8, kind: output, shape index: {0}]   ;;  %s2203_s9 = inlined_call_operand.vmem [shape: f32[1,8,128], index: 9, kind: output, shape index: {1}]  }
   0x1   :  { %v41_v0 = vld [vmem:[%s2194_s0] sm:$0xff]  ;;  %v42_v1 = vld [vmem:[%s2194_s0 + $0x8] sm:$0xff]  ;;  %v43_v2 = vld [vmem:[%s2194_s0 + $0x10] sm:$0xff] }
   0x2   :  { %v1644_v3 = vpack.c.bf16 %v42_v1, %v41_v0  ;;  %v44_v4 = vld [vmem:[%s2194_s0 + $0x18] sm:$0xff]  ;;  %v32_v5 = vld [vmem:[%s2195_s5] sm:$0xff]  ;;  %v1758_v8 = vpack.i.bf16 %v42_v1, %v41_v0  ;;  %v1882_v9 = vld [vmem:[%s2195_s5 + $0x8] sm:$0xff] }
   0x3   :  { %v1874_v6 = vld [vmem:[%s2195_s5 + $0x20] sm:$0xff]  ;;  %v1648_v7 = vpack.c.bf16 %v44_v4, %v43_v2  ;;  %1484 = vmatprep.mubr.msk.f32.mxu0 %vm45_vm0, %v32_v5  ;;  %v1887_v10 = vld [vmem:[%s2195_s5 + $0x28] sm:$0xff]  ;;  %v1763_v11 = vpack.i.bf16 %v44_v4, %v43_v2  ;;  %v1893_v12 = vld [vmem:[%s2195_s5 + $0x10] sm:$0xff] }
   0x4   :  { %1498 = vmatprep.mubr.msk.f32.mxu1 %vm45_vm0, %v1874_v6  ;;  %1645 = vmatprep.subr.bf16.mxu0 %v1644_v3  ;;  %v1898_v13 = vld [vmem:[%s2195_s5 + $0x30] sm:$0xff]  ;;  %v1768_v15 = vld [vmem:[%s2196_s1] sm:$0xff]   ;;  %v1911_v16 = vld [vmem:[%s2195_s5 + $0x18] sm:$0xff] }
   0x5   :  { %1653 = vmatprep.subr.bf16.mxu1 %v1644_v3  ;;  %1647 = vmatpush3.bf16.msra.mxu0 %v1644_v3  ;;  %v1920_v17 = vld [vmem:[%s2195_s5 + $0x38] sm:$0xff]  ;;  %v1769_v18 = vld [vmem:[%s2196_s1 + $0x8] sm:$0xff]   ;;  %v1770_v19 = vld [vmem:[%s2196_s1 + $0x10] sm:$0xff]  }
   0x6   :  { %1655 = vmatpush3.bf16.msra.mxu1 %v1644_v3  ;;  %1649 = vmatprep.subr.bf16.mxu0 %v1648_v7  ;;  %v1771_v20 = vld [vmem:[%s2196_s1 + $0x18] sm:$0xff]   ;;  %v1772_v21 = vld [vmem:[%s2196_s1 + $0x20] sm:$0xff]   ;;  %v1773_v22 = vld [vmem:[%s2196_s1 + $0x28] sm:$0xff]  }
   0x7   :  { %1657 = vmatprep.subr.bf16.mxu1 %v1648_v7  ;;  %1759 = vrot.lane.b32.xlu0 %v1758_v8, %s1804_s24  ;;  %v1774_v23 = vld [vmem:[%s2196_s1 + $0x30] sm:$0xff]   ;;  %v1775_v24 = vld [vmem:[%s2196_s1 + $0x38] sm:$0xff]   ;;  %v1776_v25 = vld [vmem:[%s2196_s1 + $0x40] sm:$0xff]  }
   0x8   :  { %v1777_v26 = vld [vmem:[%s2196_s1 + $0x48] sm:$0xff]   ;;  %v1778_v27 = vld [vmem:[%s2196_s1 + $0x50] sm:$0xff]   ;;  %v1779_v28 = vld [vmem:[%s2196_s1 + $0x58] sm:$0xff]  }
   0x9   :  { %1651 = vmatpush3.bf16.msra.mxu0 %v1648_v7  ;;  %v1787_v51 = vld [vmem:[%s2197_s3 + $0x80] sm:$0xff]   ;;  %v1790_v52 = vld [vmem:[%s2197_s3 + $0x88] sm:$0xff]   ;;  %v1793_v53 = vld [vmem:[%s2197_s3 + $0x90] sm:$0xff]  }
   0xa   :  { %1659 = vmatpush3.bf16.msra.mxu1 %v1648_v7  ;;  %374 = vmatprep.subr.bf16.mxu0 %v1805_v14  ;;  %v1796_v54 = vld [vmem:[%s2197_s3 + $0x98] sm:$0xff]   ;;  %v1288_v55 = vld [vmem:[%s2198_s2] ss:$0 sm:$0xff] }
   0xb   :  { %1764 = vrot.lane.b32.xlu0 %v1763_v11, %s1804_s24 }
   0xc   :  { %1485 = vmatmul.mubr.msk.f32.vlgmr.msra.gmra.mrb[0].mxu0 %vm45_vm0, %v1882_v9 }
   0xd   :  { %1499 = vmatmul.mubr.msk.f32.vlgmr.msra.gmra.mrb[0].mxu1 %vm45_vm0, %v1887_v10  ;;  %1487 = vmatprep.mubr.msk.f32.mxu0 %vm45_vm0, %v1893_v12 }
   0xe   :  { %1501 = vmatprep.mubr.msk.f32.mxu1 %vm45_vm0, %v1898_v13  ;;  %375 = vmatpush1.bf16.msra.mxu0 %v1768_v15  ;;  %v1780_v15 = vld [vmem:[%s2197_s3 + $0x40] sm:$0xff]  }
   0xf   :  { %376 = vmatprep.subr.bf16.mxu0 %v1805_v14 }
  0x10   :  { %1488 = vmatmul.mubr.msk.f32.gmra.mrb[2].mxu0 %vm45_vm0, %v1911_v16 }
  0x11   :  { %1502 = vmatmul.mubr.msk.f32.gmra.mrb[2].mxu1 %vm45_vm0, %v1920_v17 }
  0x12   :  { %1512 = vmatprep.mubr.msk.f32.mxu1 %vm45_vm0, %v32_v5  ;;  %377 = vmatpush1.bf16.msra.mxu0 %v1769_v18  ;;  %v1788_v18 = vld [vmem:[%s2197_s3 + $0x18] sm:$0xff]  }
  0x13   :  { %378 = vmatprep.subr.bf16.mxu0 %v1805_v14 }
  0x16   :  { %379 = vmatpush1.bf16.msra.mxu0 %v1770_v19  ;;  %v1791_v19 = vld [vmem:[%s2197_s3 + $0x20] sm:$0xff]  }
  0x17   :  { %380 = vmatprep.subr.bf16.mxu0 %v1805_v14 }
  0x1a   :  { %381 = vmatpush1.bf16.msra.mxu0 %v1771_v20  ;;  %v1792_v20 = vld [vmem:[%s2197_s3 + $0x68] sm:$0xff]  }
  0x1b   :  { %382 = vmatprep.subr.bf16.mxu0 %v1805_v14 }
  0x1e   :  { %383 = vmatpush1.bf16.msra.mxu0 %v1772_v21  ;;  %v1794_v21 = vld [vmem:[%s2197_s3 + $0x28] sm:$0xff]  }
  0x1f   :  { %384 = vmatprep.subr.bf16.mxu0 %v1805_v14 }
  0x22   :  { %385 = vmatpush1.bf16.msra.mxu0 %v1773_v22  ;;  %v1795_v22 = vld [vmem:[%s2197_s3 + $0x70] sm:$0xff]  }
  0x23   :  { %386 = vmatprep.subr.bf16.mxu0 %v1805_v14 }
  0x26   :  { %387 = vmatpush1.bf16.msra.mxu0 %v1774_v23  ;;  %v1797_v23 = vld [vmem:[%s2197_s3 + $0x30] sm:$0xff]  }
  0x27   :  { %388 = vmatprep.subr.bf16.mxu0 %v1805_v14 }
  0x2a   :  { %389 = vmatpush1.bf16.msra.mxu0 %v1775_v24  ;;  %v1798_v24 = vld [vmem:[%s2197_s3 + $0x78] sm:$0xff]  }
  0x2b   :  { %390 = vmatprep.subr.bf16.mxu0 %v1805_v14 }
  0x2e   :  { %391 = vmatpush1.bf16.msra.mxu0 %v1776_v25  ;;  %v1799_v25 = vld [vmem:[%s2197_s3 + $0xa0] sm:$0xff]  }
  0x2f   :  { %392 = vmatprep.subr.bf16.mxu0 %v1805_v14 }
  0x32   :  { %393 = vmatpush1.bf16.msra.mxu0 %v1777_v26  ;;  %v1800_v26 = vld [vmem:[%s2197_s3 + $0x38] sm:$0xff]  }
  0x33   :  { %394 = vmatprep.subr.bf16.mxu0 %v1805_v14 }
  0x36   :  { %395 = vmatpush1.bf16.msra.mxu0 %v1778_v27  ;;  %v1801_v27 = vld [vmem:[%s2197_s3 + $0xa8] sm:$0xff]  }
  0x37   :  { %396 = vmatprep.subr.bf16.mxu0 %v1805_v14 }
  0x3a   :  { %397 = vmatpush1.bf16.msra.mxu0 %v1779_v28  ;;  %v1802_v28 = vld [vmem:[%s2197_s3 + $0xb0] sm:$0xff]  }
  0x3b   :  { %1532 = vmatprep.subr.bf16.mxu0 %v1787_v51 }
  0x79   :  { %v1760_v29 = vpop.permute.xlu0 %1759 }
  0x7a   :  { %v1762_v30 = vunpack.i.h.bf16 %v1760_v29  ;;  %v1761_v31 = vunpack.i.l.bf16 %v1760_v29  ;;  %v1803_v29 = vld [vmem:[%s2197_s3 + $0xb8] sm:$0xff]  }
  0x7d   :  { %v1765_v32 = vpop.permute.xlu0 %1764 }
  0x7e   :  { %v1767_v38 = vunpack.i.h.bf16 %v1765_v32  ;;  %v1766_v41 = vunpack.i.l.bf16 %v1765_v32 }
  0xdf   :  { %v1486_v33 = vpop.f32.mrb[0].mxu0 }
  0xe0   :  { %v1500_v34 = vpop.f32.mrb[0].mxu1  ;;  %v258_v35 = vsel %vm256_vm1, %v1486_v33, %v1762_v30  ;;  %v124_v36 = vpop.f32.mrb[1].mxu0 }
  0xe1   :  { %v221_v37 = vpop.f32.mrb[1].mxu1  ;;  %v257_v39 = vsel %vm256_vm1, %v124_v36, %v1761_v31 }
  0xe2   :  { %v262_v40 = vpack.c.bf16 %v1500_v34, %v221_v37  ;;  %v261_v42 = vpack.c.bf16 %v258_v35, %v257_v39 }
  0xe3   :  { %v1489_v43 = vpop.f32.mrb[2].mxu0 }
  0xe4   :  { %1301 = vmatprep.mubr.msk.bf16.mxu0 %vm256_vm1, %v262_v40  ;;  %v1503_v44 = vpop.f32.mrb[2].mxu1  ;;  %v260_v45 = vsel %vm256_vm1, %v1489_v43, %v1767_v38  ;;  %v134_v46 = vpop.f32.mrb[3].mxu0  ;;  %v1342_v43 = vld [vmem:[%s2200_s7 + $0x80] sm:$0xff] }
  0xe5   :  { %407 = vmatmul.mubr.bf16.vlgmr.msra.gmra.mrb[4].mxu0 %v261_v42  ;;  %v231_v47 = vpop.f32.mrb[3].mxu1  ;;  %v259_v48 = vsel %vm256_vm1, %v134_v46, %v1766_v41  ;;  %v908_v42 = vld [vmem:[%s2199_s6] sm:$0xff]  ;;  %v1344_v46 = vld [vmem:[%s2200_s7 + $0x90] sm:$0xff] }
  0xe6   :  { %v264_v49 = vpack.c.bf16 %v1503_v44, %v231_v47  ;;  %v263_v50 = vpack.c.bf16 %v260_v45, %v259_v48  ;;  %1533 = vmatpush3.bf16.msra.mxu0 %v1787_v51  ;;  %v1343_v44 = vld [vmem:[%s2200_s7 + $0x88] sm:$0xff]  ;;  %v1345_v47 = vld [vmem:[%s2200_s7 + $0x98] sm:$0xff] }
  0xe7   :  { %1534 = vmatprep.subr.bf16.mxu0 %v1790_v52  ;;  %v1724_v45 = vpack.c.bf16 %v1343_v44, %v1342_v43  ;;  %v1728_v48 = vpack.c.bf16 %v1345_v47, %v1344_v46  ;;  %v1083_v43 = vld [vmem:[%s2200_s7 + $0x30] sm:$0xff]  ;;  %v1084_v44 = vld [vmem:[%s2200_s7 + $0x38] sm:$0xff]  ;;  %v1085_v46 = vld [vmem:[%s2200_s7 + $0x40] sm:$0xff] }
  0xe8   :  { %1302 = vmatprep.mubr.msk.bf16.mxu0 %vm256_vm1, %v264_v49  ;;  %v1346_v49 = vld [vmem:[%s2200_s7 + $0xa0] sm:$0xff]  ;;  %v1086_v47 = vld [vmem:[%s2200_s7 + $0x48] sm:$0xff] }
  0xea   :  { %1535 = vmatpush3.bf16.msra.mxu0 %v1790_v52  ;;  %v1348_v52 = vld [vmem:[%s2200_s7 + $0xb0] sm:$0xff] }
  0xeb   :  { %1536 = vmatprep.subr.bf16.mxu0 %v1793_v53 }
  0xed   :  { %415 = vmatmul.mubr.bf16.gmra.mrb[8].mxu0 %v263_v50  ;;  %v1347_v50 = vld [vmem:[%s2200_s7 + $0xa8] sm:$0xff] }
  0xee   :  { %1537 = vmatpush3.bf16.msra.mxu0 %v1793_v53  ;;  %v1732_v51 = vpack.c.bf16 %v1347_v50, %v1346_v49  ;;  %v1349_v53 = vld [vmem:[%s2200_s7 + $0xb8] sm:$0xff]  ;;  %v1087_v49 = vld [vmem:[%s2200_s7 + $0x50] sm:$0xff] }
  0xef   :  { %1538 = vmatprep.subr.bf16.mxu0 %v1796_v54  ;;  %v1088_v50 = vld [vmem:[%s2200_s7 + $0x58] sm:$0xff] }
  0xf2   :  { %1539 = vmatpush3.bf16.msra.mxu0 %v1796_v54  ;;  %v1736_v54 = vpack.c.bf16 %v1349_v53, %v1348_v52  ;;  %v1089_v52 = vld [vmem:[%s2200_s7 + $0x60] sm:$0xff]  ;;  %v1090_v53 = vld [vmem:[%s2200_s7 + $0x68] sm:$0xff] }
  0xf3   :  { %1540 = vmatprep.subr.bf16.mxu0 %v1799_v25 }
  0xf6   :  { %1541 = vmatpush3.bf16.msra.mxu0 %v1799_v25 }
  0xf7   :  { %1542 = vmatprep.subr.bf16.mxu0 %v1801_v27 }
  0xfa   :  { %1543 = vmatpush3.bf16.msra.mxu0 %v1801_v27 }
  0xfb   :  { %1544 = vmatprep.subr.bf16.mxu0 %v1802_v28 }
  0xfe   :  { %1545 = vmatpush3.bf16.msra.mxu0 %v1802_v28 }
  0xff   :  { %1546 = vmatprep.subr.bf16.mxu0 %v1803_v29 }
 0x102   :  { %1547 = vmatpush3.bf16.msra.mxu0 %v1803_v29 }
 0x103   :  { %1725 = vmatprep.subr.bf16.mxu0 %v1724_v45 }
 0x1b8   :  { %v408_v56 = vpop.f32.mrb[4].mxu0 }
 0x1b9   :  { %v409_v57 = vadd.f32 %v1288_v55, %v408_v56  ;;  %v410_v58 = vpop.f32.mrb[5].mxu0  ;;  %v1351_v56 = vld [vmem:[%s2200_s7 + $0xc8] sm:$0xff] }
 0x1ba   :  { %v411_v59 = vpop.f32.mrb[6].mxu0  ;;  %v1352_v58 = vld [vmem:[%s2200_s7 + $0xd0] sm:$0xff] }
 0x1bb   :  { %v412_v60 = vadd.f32 %v1288_v55, %v411_v59  ;;  %v413_v61 = vpop.f32.mrb[7].mxu0  ;;  %v423_v62 = vmax.f32 %v409_v57, 0.0  ;;  %v1353_v59 = vld [vmem:[%s2200_s7 + $0xd8] sm:$0xff] }
 0x1bc   :  { %v1354_v61 = vld [vmem:[%s2200_s7 + $0xe0] sm:$0xff] }
 0x1bd   :  { %v424_v63 = vmax.f32 %v412_v60, 0.0  ;;  %v1744_v60 = vpack.c.bf16 %v1353_v59, %v1352_v58  ;;  %v1357_v59 = vld [vmem:[%s2200_s7 + $0xf8] sm:$0xff] }
 0x1bf   :  { %v1660_v0 = vpack.c.bf16 %v424_v63, %v423_v62  ;;  %v1355_v62 = vld [vmem:[%s2200_s7 + $0xe8] sm:$0xff] }
 0x1c0   :  { %v416_v1 = vpop.f32.mrb[8].mxu0  ;;  %v1748_v63 = vpack.c.bf16 %v1355_v62, %v1354_v61 }
 0x1c1   :  { %v417_v2 = vadd.f32 %v1288_v55, %v416_v1  ;;  %v418_v3 = vpop.f32.mrb[9].mxu0  ;;  %1661 = vmatprep.subr.bf16.mxu1 %v1660_v0 }
 0x1c2   :  { %v419_v4 = vpop.f32.mrb[10].mxu0  ;;  %1663 = vmatpush3.bf16.msra.mxu1 %v1660_v0 }
 0x1c3   :  { %v420_v5 = vadd.f32 %v1288_v55, %v419_v4  ;;  %v421_v7 = vpop.f32.mrb[11].mxu0  ;;  %v425_v8 = vmax.f32 %v417_v2, 0.0  ;;  %v1350_v55 = vld [vmem:[%s2200_s7 + $0xc0] sm:$0xff] }
 0x1c4   :  { %v1740_v57 = vpack.c.bf16 %v1351_v56, %v1350_v55  ;;  %v1091_v55 = vld [vmem:[%s2200_s7 + $0x70] sm:$0xff]  ;;  %v1092_v56 = vld [vmem:[%s2200_s7 + $0x78] sm:$0xff] }
 0x1c5   :  { %v426_v11 = vmax.f32 %v420_v5, 0.0  ;;  %v1720_v58 = vpack.c.bf16 %v1092_v56, %v1091_v55 }
 0x1c7   :  { %v1981_v14 = vpack.c.bf16 %v426_v11, %v425_v8  ;;  %v1311_v11 = vld [vmem:[%s2201_s4] ss:$0 sm:$0xff] }
 0x1c9   :  { %1665 = vmatprep.subr.bf16.mxu1 %v1981_v14 }
 0x1ca   :  { %1667 = vmatpush3.bf16.msra.mxu1 %v1981_v14 }
 0x1cb   :  { %1669 = vmatprep.subr.bf16.mxu1 %v1660_v0 }
 0x1cd   :  { %1513 = vmatmul.mubr.msk.f32.vlgmr.msra.gmra.mrb[4].mxu1 %vm45_vm0, %v1882_v9  ;;  %v1781_v9 = vld [vmem:[%s2197_s3] sm:$0xff]  }
 0x1ce   :  { %1671 = vmatpush3.bf16.msra.mxu1 %v1660_v0  ;;  %1515 = vmatprep.mubr.msk.f32.mxu1 %vm45_vm0, %v1893_v12  ;;  %v1782_v12 = vld [vmem:[%s2197_s3 + $0x48] sm:$0xff]  }
 0x1cf   :  { %1673 = vmatprep.subr.bf16.mxu1 %v1981_v14 }
 0x1d1   :  { %1516 = vmatmul.mubr.msk.f32.gmra.mrb[6].mxu1 %vm45_vm0, %v1911_v16  ;;  %v1784_v16 = vld [vmem:[%s2197_s3 + $0x50] sm:$0xff]  }
 0x1d2   :  { %1675 = vmatpush3.bf16.msra.mxu1 %v1981_v14  ;;  %1526 = vmatprep.mubr.msk.f32.mxu1 %vm45_vm0, %v1874_v6  ;;  %v1783_v6 = vld [vmem:[%s2197_s3 + $0x8] sm:$0xff]  }
 0x1d3   :  { %1390 = vmatprep.subr.bf16.mxu1 %v1780_v15 }
 0x1d5   :  { %1527 = vmatmul.mubr.msk.f32.vlgmr.msra.gmra.mrb[8].mxu1 %vm45_vm0, %v1887_v10  ;;  %v1785_v10 = vld [vmem:[%s2197_s3 + $0x10] sm:$0xff]  }
 0x1d6   :  { %1529 = vmatprep.mubr.msk.f32.mxu1 %vm45_vm0, %v1898_v13  ;;  %1391 = vmatpush3.bf16.msra.mxu1 %v1781_v9  ;;  %v1786_v13 = vld [vmem:[%s2197_s3 + $0x58] sm:$0xff]  }
 0x1d7   :  { %1392 = vmatprep.subr.bf16.mxu1 %v1782_v12 }
 0x1d9   :  { %1530 = vmatmul.mubr.msk.f32.gmra.mrb[10].mxu1 %vm45_vm0, %v1920_v17  ;;  %v1789_v17 = vld [vmem:[%s2197_s3 + $0x60] sm:$0xff]  }
 0x1da   :  { %834 = vmatprep.mubr.bf16.mxu1 %v1660_v0  ;;  %1393 = vmatpush3.bf16.msra.mxu1 %v1783_v6 }
 0x1db   :  { %1394 = vmatprep.subr.bf16.mxu1 %v1784_v16 }
 0x1de   :  { %1395 = vmatpush3.bf16.msra.mxu1 %v1785_v10 }
 0x1df   :  { %1396 = vmatprep.subr.bf16.mxu1 %v1786_v13 }
 0x1e2   :  { %1397 = vmatpush3.bf16.msra.mxu1 %v1788_v18 }
 0x1e3   :  { %1398 = vmatprep.subr.bf16.mxu1 %v1789_v17 }
 0x1e6   :  { %1399 = vmatpush3.bf16.msra.mxu1 %v1791_v19 }
 0x1e7   :  { %1400 = vmatprep.subr.bf16.mxu1 %v1792_v20 }
 0x1ea   :  { %1401 = vmatpush3.bf16.msra.mxu1 %v1794_v21 }
 0x1eb   :  { %1402 = vmatprep.subr.bf16.mxu1 %v1795_v22 }
 0x1ee   :  { %1403 = vmatpush3.bf16.msra.mxu1 %v1797_v23 }
 0x1ef   :  { %1404 = vmatprep.subr.bf16.mxu1 %v1798_v24 }
 0x1f2   :  { %1405 = vmatpush3.bf16.msra.mxu1 %v1800_v26 }
 0x2a0   :  { %v1514_v30 = vpop.f32.mrb[4].mxu1 }
 0x2a1   :  { %v493_v31 = vpop.f32.mrb[5].mxu1 }
 0x2a2   :  { %v597_v32 = vpack.c.bf16 %v1514_v30, %v493_v31  ;;  %v909_v31 = vld [vmem:[%s2199_s6 + $0x8] sm:$0xff] }
 0x2a4   :  { %v1517_v33 = vpop.f32.mrb[6].mxu1  ;;  %835 = vmatmul.mubr.bf16.vlgmr.msra.gmra.mrb[12].mxu1 %v597_v32  ;;  %v1338_v32 = vld [vmem:[%s2199_s6 + $0x10] sm:$0xff] }
 0x2a5   :  { %v503_v34 = vpop.f32.mrb[7].mxu1  ;;  %842 = vmatprep.mubr.bf16.mxu1 %v1981_v14 }
 0x2a6   :  { %v600_v35 = vpack.c.bf16 %v1517_v33, %v503_v34  ;;  %v1077_v33 = vld [vmem:[%s2200_s7] sm:$0xff]  ;;  %v1078_v34 = vld [vmem:[%s2200_s7 + $0x8] sm:$0xff] }
 0x2a8   :  { %v1528_v36 = vpop.f32.mrb[8].mxu1 }
 0x2a9   :  { %v578_v37 = vpop.f32.mrb[9].mxu1 }
 0x2aa   :  { %v599_v38 = vpack.c.bf16 %v1528_v36, %v578_v37  ;;  %v1079_v36 = vld [vmem:[%s2200_s7 + $0x10] sm:$0xff]  ;;  %v1080_v37 = vld [vmem:[%s2200_s7 + $0x18] sm:$0xff] }
 0x2ac   :  { %v1531_v39 = vpop.f32.mrb[10].mxu1  ;;  %843 = vmatmul.mubr.bf16.gmra.mrb[16].mxu1 %v600_v35  ;;  %1548 = vmatprep.mubr.bf16.mxu0 %v599_v38  ;;  %v1692_v35 = vpack.c.bf16 %v1078_v34, %v1077_v33  ;;  %v1339_v38 = vld [vmem:[%s2199_s6 + $0x18] sm:$0xff] }
 0x2ad   :  { %v588_v40 = vpop.f32.mrb[11].mxu1  ;;  %1560 = vmatprep.mubr.msk.f32.mxu1 %vm45_vm0, %v908_v42 }
 0x2ae   :  { %v602_v41 = vpack.c.bf16 %v1531_v39, %v588_v40  ;;  %v1696_v39 = vpack.c.bf16 %v1080_v37, %v1079_v36  ;;  %v1081_v40 = vld [vmem:[%s2200_s7 + $0x20] sm:$0xff] }
 0x2b0   :  { %1549 = vmatmul.mubr.bf16.vlgmr.msra.gmra.mrb[12].mxu0 %v602_v41  ;;  %v1082_v41 = vld [vmem:[%s2200_s7 + $0x28] sm:$0xff] }
 0x2b1   :  { %1727 = vmatpush3.bf16.msra.mxu0 %v1724_v45  ;;  %v1700_v42 = vpack.c.bf16 %v1082_v41, %v1081_v40  ;;  %v1704_v45 = vpack.c.bf16 %v1084_v44, %v1083_v43 }
 0x2b2   :  { %1729 = vmatprep.subr.bf16.mxu0 %v1728_v48 }
 0x2b5   :  { %1731 = vmatpush3.bf16.msra.mxu0 %v1728_v48  ;;  %v1708_v48 = vpack.c.bf16 %v1086_v47, %v1085_v46 }
 0x2b6   :  { %1733 = vmatprep.subr.bf16.mxu0 %v1732_v51 }
 0x2b9   :  { %1735 = vmatpush3.bf16.msra.mxu0 %v1732_v51  ;;  %v1712_v51 = vpack.c.bf16 %v1088_v50, %v1087_v49 }
 0x2ba   :  { %1737 = vmatprep.subr.bf16.mxu0 %v1736_v54 }
 0x2bd   :  { %1739 = vmatpush3.bf16.msra.mxu0 %v1736_v54  ;;  %v1716_v54 = vpack.c.bf16 %v1090_v53, %v1089_v52 }
 0x2be   :  { %1741 = vmatprep.subr.bf16.mxu0 %v1740_v57 }
 0x2c1   :  { %1743 = vmatpush3.bf16.msra.mxu0 %v1740_v57  ;;  %v1356_v57 = vld [vmem:[%s2200_s7 + $0xf0] sm:$0xff] }
 0x2c2   :  { %1745 = vmatprep.subr.bf16.mxu0 %v1744_v60 }
 0x2c5   :  { %1747 = vmatpush3.bf16.msra.mxu0 %v1744_v60  ;;  %v1752_v60 = vpack.c.bf16 %v1357_v59, %v1356_v57 }
 0x2c6   :  { %1749 = vmatprep.subr.bf16.mxu0 %v1748_v63 }
 0x2c9   :  { %1751 = vmatpush3.bf16.msra.mxu0 %v1748_v63 }
 0x2ca   :  { %1753 = vmatprep.subr.bf16.mxu0 %v1752_v60 }
 0x2cd   :  { %1755 = vmatpush3.bf16.msra.mxu0 %v1752_v60 }
 0x377   :  { %v1406_v0 = vpop.f32.mrb[12].mxu1 }
 0x378   :  { %v1407_v1 = vpop.f32.mrb[13].mxu1 }
 0x379   :  { %v1408_v2 = vadd.f32 %v1407_v1, %v1406_v0  ;;  %v1409_v3 = vpop.f32.mrb[14].mxu1 }
 0x37a   :  { %v1410_v4 = vpop.f32.mrb[15].mxu1 }
 0x37b   :  { %v1411_v5 = vadd.f32 %v1410_v4, %v1409_v3  ;;  %v837_v10 = vadd.f32 %v1408_v2, %v1311_v11 }
 0x37d   :  { %v840_v21 = vadd.f32 %v1411_v5, %v1311_v11 }
 0x37f   :  { %v1412_v7 = vpop.f32.mrb[16].mxu1 }
 0x380   :  { %v1413_v8 = vpop.f32.mrb[17].mxu1 }
 0x381   :  { %v1414_v14 = vadd.f32 %v1413_v8, %v1412_v7  ;;  %v1415_v15 = vpop.f32.mrb[18].mxu1 }
 0x382   :  { %v1416_v9 = vpop.f32.mrb[19].mxu1 }
 0x383   :  { %v1417_v12 = vadd.f32 %v1416_v9, %v1415_v15  ;;  %v845_v6 = vadd.f32 %v1414_v14, %v1311_v11  ;;  %v1550_v16 = vpop.f32.mrb[12].mxu0 }
 0x384   :  { %v885_v13 = vpop.f32.mrb[13].mxu0 }
 0x385   :  { %v894_v18 = vadd.f32 %v1550_v16, %v845_v6  ;;  %v886_v17 = vadd.f32 %v885_v13, %v837_v10  ;;  %v848_v19 = vadd.f32 %v1417_v12, %v1311_v11  ;;  %v1551_v20 = vpop.f32.mrb[14].mxu0 }
 0x386   :  { %v888_v22 = vpop.f32.mrb[15].mxu0 }
 0x387   :  { %v902_v23 = vmax.f32 %v894_v18, 0.0  ;;  %v900_v24 = vmax.f32 %v886_v17, 0.0  ;;  %v897_v25 = vadd.f32 %v1551_v20, %v848_v19  ;;  %v889_v26 = vadd.f32 %v888_v22, %v840_v21 }
 0x389   :  { %906 = vst [vmem:[%s2202_s8 + $0x10] sm:$0xff] %v902_v23  ;;  %904 = vst [vmem:[%s2202_s8] sm:$0xff] %v900_v24  ;;  %v903_v27 = vmax.f32 %v897_v25, 0.0  ;;  %v901_v28 = vmax.f32 %v889_v26, 0.0 }
 0x38b   :  { %907 = vst [vmem:[%s2202_s8 + $0x18] sm:$0xff] %v903_v27  ;;  %v1680_v29 = vpack.c.bf16 %v903_v27, %v902_v23  ;;  %905 = vst [vmem:[%s2202_s8 + $0x8] sm:$0xff] %v901_v28  ;;  %v1676_v30 = vpack.c.bf16 %v901_v28, %v900_v24 }
 0x38d   :  { %1677 = vmatprep.subr.bf16.mxu1 %v1676_v30 }
 0x38e   :  { %1679 = vmatpush3.bf16.msra.mxu1 %v1676_v30 }
 0x38f   :  { %1681 = vmatprep.subr.bf16.mxu1 %v1680_v29 }
 0x392   :  { %1683 = vmatpush3.bf16.msra.mxu1 %v1680_v29 }
 0x393   :  { %1685 = vmatprep.subr.bf16.mxu1 %v1676_v30 }
 0x395   :  { %1561 = vmatmul.mubr.msk.f32.vlgmr.msra.gmra.mrb[20].mxu1 %vm45_vm0, %v909_v31 }
 0x396   :  { %1687 = vmatpush3.bf16.msra.mxu1 %v1676_v30  ;;  %1571 = vmatprep.mubr.msk.f32.mxu1 %vm45_vm0, %v1338_v32 }
 0x397   :  { %1689 = vmatprep.subr.bf16.mxu1 %v1680_v29 }
 0x39a   :  { %1691 = vmatpush3.bf16.msra.mxu1 %v1680_v29 }
 0x39b   :  { %1693 = vmatprep.subr.bf16.mxu1 %v1692_v35 }
 0x39d   :  { %1572 = vmatmul.mubr.msk.f32.vlgmr.msra.gmra.mrb[22].mxu1 %vm45_vm0, %v1339_v38 }
 0x39e   :  { %1695 = vmatpush3.bf16.msra.mxu1 %v1692_v35 }
 0x39f   :  { %1697 = vmatprep.subr.bf16.mxu1 %v1696_v39 }
 0x3a2   :  { %1699 = vmatpush3.bf16.msra.mxu1 %v1696_v39 }
 0x3a3   :  { %1701 = vmatprep.subr.bf16.mxu1 %v1700_v42 }
 0x3a6   :  { %1703 = vmatpush3.bf16.msra.mxu1 %v1700_v42 }
 0x3a7   :  { %1705 = vmatprep.subr.bf16.mxu1 %v1704_v45 }
 0x3aa   :  { %1707 = vmatpush3.bf16.msra.mxu1 %v1704_v45 }
 0x3ab   :  { %1709 = vmatprep.subr.bf16.mxu1 %v1708_v48 }
 0x3ae   :  { %1711 = vmatpush3.bf16.msra.mxu1 %v1708_v48 }
 0x3af   :  { %1713 = vmatprep.subr.bf16.mxu1 %v1712_v51 }
 0x3b2   :  { %1715 = vmatpush3.bf16.msra.mxu1 %v1712_v51 }
 0x3b3   :  { %1717 = vmatprep.subr.bf16.mxu1 %v1716_v54 }
 0x3b6   :  { %1719 = vmatpush3.bf16.msra.mxu1 %v1716_v54 }
 0x3b7   :  { %1721 = vmatprep.subr.bf16.mxu1 %v1720_v58 }
 0x3ba   :  { %1723 = vmatpush3.bf16.msra.mxu1 %v1720_v58 }
 0x468   :  { %v1562_v61 = vpop.f32.mrb[20].mxu1 }
 0x469   :  { %v982_v62 = vpop.f32.mrb[21].mxu1 }
 0x470   :  { %v1573_v63 = vpop.f32.mrb[22].mxu1 }
 0x471   :  { %v1076_v0 = vmax.f32 %v1562_v61, %v1573_v63  ;;  %v1066_v1 = vpop.f32.mrb[23].mxu1 }
 0x472   :  { %v1075_v2 = vmax.f32 %v982_v62, %v1066_v1 }
 0x474   :  { %1606 = vmatprep.mubr.f32.mxu1 %v1075_v2  ;;  %1641 = vmatprep.mubr.f32.mxu0 %v1075_v2 }
 0x475   :  { %1607 = vmatmul.mubr.f32.vlgmr.msra.gmra.mrb[24].mxu1 %v1076_v0  ;;  %1642 = vmatmul.mubr.f32.vlgmr.msra.gmra.mrb[16].mxu0 %v1076_v0 }
 0x548   :  { %v1608_v3 = vpop.f32.mrb[24].mxu1  ;;  %v1643_v4 = vpop.f32.mrb[16].mxu0 }
 0x549   :  { %v1261_v5 = vmax.f32 %v1608_v3, %v1643_v4  ;;  %v1159_v7 = vpop.f32.mrb[25].mxu1  ;;  %v1251_v8 = vpop.f32.mrb[17].mxu0 }
 0x54a   :  { %v1260_v11 = vmax.f32 %v1159_v7, %v1251_v8 }
 0x54b   :  { %1263 = vrot.lane.b32.xlu1 %v1261_v5, %s1804_s24 }
 0x5bd   :  { %v1264_v14 = vpop.permute.xlu1 %1263 }
 0x5be   :  { %v1266_v15 = vsel %vm256_vm1, %v1260_v11, %v1264_v14 }
 0x5bf   :  { %1267 = vst [vmem:[%s2203_s9] sm:$0xff] %v1266_v15 }

</bundles_post_ra>
